<compile_context>
chip_gen: v7x
topology: tpu7x:2x2x1
jax: 0.10.0
libtpu: 0.0.40
codegen_flags: <defaults>
</compile_context>

<pallas_src>
import numpy as np
import jax
import jax.numpy as jnp
from jax import lax
from jax.experimental import pallas as pl
from jax.experimental.pallas import tpu as pltpu


def _round_up(v, m):
    return ((v + m - 1) // m) * m


def rnnpred_kernel(x_ref, wpack_ref, fc_ref, out_ref, add_scr, p_scr):
    """Packed-state wavefront forward pass of the 3-layer stacked RNN + FC.

    x_ref    : (T+2, ISp)            time-major input, 2 trailing zero rows
    wpack_ref: (SP+ISp+T+2, SP)      [W_big ; W_in_pad ; gated bias rows]
    fc_ref   : (SP+8, O)             [W_fc padded to SP rows ; b_fc row ; 0]
    out_ref  : (T, O)
    add_scr  : (T+2, SP) VMEM scratch (per-wave-step additive term)
    p_scr    : (T, SP)   VMEM scratch (collected packed rows, waves 2..T+1)
    """
    Tp2, ISp = x_ref.shape
    T = Tp2 - 2
    SP = wpack_ref.shape[1]

    # One-time loads, hoisted out of the recurrence.
    W_big = wpack_ref[0:SP, :]                              # (SP, SP)
    W_in = wpack_ref[SP:SP + ISp, :]                        # (ISp, SP)
    b_rows = wpack_ref[SP + ISp:SP + ISp + Tp2, :]          # (T+2, SP)
    W_fc = fc_ref[0:SP, :]                                  # (SP, O)
    b_fc = fc_ref[SP:SP + 1, :]                             # (1, O)

    # Per-wave-step additive term: layer-1 input projection for ALL steps in
    # one MXU matmul, plus the gated per-layer biases.  Parked in VMEM so the
    # per-step row read is a cheap vld off the dependent chain.
    add_scr[...] = (
        jnp.dot(x_ref[...], W_in, preferred_element_type=jnp.float32) + b_rows)

    # Wavefront recurrence over the packed state
    #   P(s) = [h1(s) | h2(s-1) | h3(s-2)]   (lanes 0:H1 | H1:H1+H2 | H1+H2:HS)
    # One (1,SP)@(SP,SP) matmul + one tanh per step; P(-1) == 0.
    p = jnp.tanh(add_scr[0:1, :])                           # P(0)
    for s in range(1, Tp2):                                 # fully unrolled
        p = jnp.tanh(
            jnp.dot(p, W_big, preferred_element_type=jnp.float32)
            + add_scr[s:s + 1, :])
        if s >= 2:                                          # h3(s-2) is valid
            p_scr[s - 2:s - 1, :] = p

    # Final Linear over all collected rows: single MXU matmul + bias.
    # W_fc rows outside the h3 lane range are zero, so h1/h2 lanes drop out.
    out_ref[...] = (
        jnp.dot(p_scr[...], W_fc, preferred_element_type=jnp.float32) + b_fc)


def rnnpred_forward(x, wpack, fc_pack):
    """x: (T, input_size) float32.  Returns (T, output_size) float32."""
    T, IS = x.shape
    Tp2 = T + 2
    SP = wpack.shape[1]
    ISp = wpack.shape[0] - SP - Tp2
    O = fc_pack.shape[1]

    # Layout plumbing only: two zero time rows (wavefront tail) + feature pad.
    x_pad = jnp.zeros((Tp2, ISp), jnp.float32).at[:T, :IS].set(x)

    vmem = pl.BlockSpec(memory_space=pltpu.MemorySpace.VMEM)
    return pl.pallas_call(
        rnnpred_kernel,
        out_shape=jax.ShapeDtypeStruct((T, O), jnp.float32),
        in_specs=[vmem, vmem, vmem],
        out_specs=vmem,
        scratch_shapes=[
            pltpu.VMEM((Tp2, SP), jnp.float32),
            pltpu.VMEM((T, SP), jnp.float32),
        ],
    )(x_pad, wpack, fc_pack)


def make_params(key, input_size, h1, h2, h3, output_size):
    """PyTorch-style U(-1/sqrt(H), 1/sqrt(H)) init; weights pre-transposed."""
    ks = jax.random.split(key, 14)

    def u(k, shape, bound):
        return jax.random.uniform(k, shape, jnp.float32, -bound, bound)

    params = {}
    dims = [(input_size, h1), (h1, h2), (h2, h3)]
    ki = 0
    for li, (din, dh) in enumerate(dims, start=1):
        bound = 1.0 / np.sqrt(dh)
        w_ih = u(ks[ki], (dh, din), bound); ki += 1          # PyTorch (H, in)
        w_hh = u(ks[ki], (dh, dh), bound); ki += 1
        b_ih = u(ks[ki], (dh,), bound); ki += 1
        b_hh = u(ks[ki], (dh,), bound); ki += 1
        params[f"wih{li}"] = w_ih.T                          # (in, H)
        params[f"whh{li}"] = w_hh.T                          # (H, H)
        params[f"b{li}"] = (b_ih + b_hh).reshape(1, dh)
    bound = 1.0 / np.sqrt(h3)
    w_fc = u(ks[ki], (output_size, h3), bound); ki += 1
    b_fc = u(ks[ki], (output_size,), bound); ki += 1
    params["w_fc"] = w_fc.T                                  # (H3, O)
    params["b_fc"] = b_fc.reshape(1, output_size)
    return params


def pack_params(params, input_size, h1, h2, h3, output_size, T):
    """Host-side (free) packing of all weights into 2 VMEM-resident buffers."""
    HS = h1 + h2 + h3
    SP = max(128, _round_up(HS, 128))
    ISp = _round_up(input_size, 8)
    Tp2 = T + 2

    def n(a):
        return np.asarray(a, np.float32)

    # Block-structured packed recurrence matrix.
    W_big = np.zeros((SP, SP), np.float32)
    W_big[0:h1, 0:h1] = n(params["whh1"])
    W_big[0:h1, h1:h1 + h2] = n(params["wih2"])
    W_big[h1:h1 + h2, h1:h1 + h2] = n(params["whh2"])
    W_big[h1:h1 + h2, h1 + h2:HS] = n(params["wih3"])
    W_big[h1 + h2:HS, h1 + h2:HS] = n(params["whh3"])

    # Layer-1 input projection, padded to the packed state width.
    W_in = np.zeros((ISp, SP), np.float32)
    W_in[0:input_size, 0:h1] = n(params["wih1"])

    # Gated bias rows: b2 active from wave step 1, b3 from wave step 2, so the
    # layers that have not started yet remain exactly at their zero init state.
    b_rows = np.zeros((Tp2, SP), np.float32)
    b_rows[:, 0:h1] = n(params["b1"])
    b_rows[1:, h1:h1 + h2] = n(params["b2"])
    b_rows[2:, h1 + h2:HS] = n(params["b3"])

    wpack = np.concatenate([W_big, W_in, b_rows], axis=0)    # (SP+ISp+T+2, SP)

    # FC slab: W_fc placed in the h3 lane rows, bias in row SP.
    fc_pack = np.zeros((SP + 8, output_size), np.float32)
    fc_pack[h1 + h2:HS, :] = n(params["w_fc"])
    fc_pack[SP:SP + 1, :] = n(params["b_fc"])

    return jnp.asarray(wpack), jnp.asarray(fc_pack)


def rnnpred_reference(x, params):
    """Pure-JAX reference of the same forward pass (for validation)."""
    def layer(inp, wih, whh, b):
        H = whh.shape[0]
        pre = inp @ wih + b                                  # (T, H)

        def step(h, p):
            h_new = jnp.tanh(p[None, :] + h @ whh)
            return h_new, h_new[0]

        _, outs = lax.scan(step, jnp.zeros((1, H), jnp.float32), pre)
        return outs                                          # (T, H)

    o1 = layer(x, params["wih1"], params["whh1"], params["b1"])
    o2 = layer(o1, params["wih2"], params["whh2"], params["b2"])
    o3 = layer(o2, params["wih3"], params["whh3"], params["b3"])
    return o3 @ params["w_fc"] + params["b_fc"]


if __name__ == "__main__":
    # Small shapes consistent with the module: seq=8, batch=1 (implied),
    # input_size=8, hidden dims 32/64/32, output_size=4.
    T, input_size = 8, 8
    h1, h2, h3, output_size = 32, 64, 32, 4

    key = jax.random.PRNGKey(0)
    k_x, k_p = jax.random.split(key)

    # PyTorch-style input would be (T, 1, input_size); squeeze batch=1 as glue.
    x_seq = jax.random.normal(k_x, (T, 1, input_size), jnp.float32)
    x = x_seq.reshape(T, input_size)

    params = make_params(k_p, input_size, h1, h2, h3, output_size)
    wpack, fc_pack = pack_params(params, input_size, h1, h2, h3,
                                 output_size, T)

    out = rnnpred_forward(x, wpack, fc_pack)
    out = jax.block_until_ready(out)

    ref = rnnpred_reference(x, params)
    assert out.shape == (T, output_size)
    np.testing.assert_allclose(np.asarray(out), np.asarray(ref),
                               rtol=1e-5, atol=1e-5)
    print("KERNEL_OK")
</pallas_src>

<mosaic_0001>
module attributes {stable_mosaic.version = 11 : i64} {
  func.func @rnnpred_kernel(%arg0: memref<10x8xf32, #tpu.memory_space<vmem>>, %arg1: memref<146x128xf32, #tpu.memory_space<vmem>>, %arg2: memref<136x4xf32, #tpu.memory_space<vmem>>, %arg3: memref<8x4xf32, #tpu.memory_space<vmem>>, %arg4: memref<10x128xf32, #tpu.memory_space<vmem>>, %arg5: memref<8x128xf32, #tpu.memory_space<vmem>>) attributes {dimension_semantics = [], scalar_prefetch = 0 : i64, scratch_operands = 2 : i64, tpu.core_type = #tpu.core_type<tc>} {
    %c0 = arith.constant 0 : index
    %c0_0 = arith.constant 0 : index
    %0 = vector.load %arg1[%c0, %c0_0] : memref<146x128xf32, #tpu.memory_space<vmem>>, vector<128x128xf32>
    %c128 = arith.constant 128 : index
    %c0_1 = arith.constant 0 : index
    %1 = vector.load %arg1[%c128, %c0_1] : memref<146x128xf32, #tpu.memory_space<vmem>>, vector<8x128xf32>
    %c136 = arith.constant 136 : index
    %c0_2 = arith.constant 0 : index
    %2 = vector.load %arg1[%c136, %c0_2] : memref<146x128xf32, #tpu.memory_space<vmem>>, vector<10x128xf32>
    %c0_3 = arith.constant 0 : index
    %c0_4 = arith.constant 0 : index
    %3 = vector.load %arg2[%c0_3, %c0_4] : memref<136x4xf32, #tpu.memory_space<vmem>>, vector<128x4xf32>
    %c128_5 = arith.constant 128 : index
    %c0_6 = arith.constant 0 : index
    %4 = vector.load %arg2[%c128_5, %c0_6] : memref<136x4xf32, #tpu.memory_space<vmem>>, vector<1x4xf32>
    %c0_7 = arith.constant 0 : index
    %c0_8 = arith.constant 0 : index
    %5 = vector.load %arg0[%c0_7, %c0_8] : memref<10x8xf32, #tpu.memory_space<vmem>>, vector<10x8xf32>
    %cst = arith.constant dense<0.000000e+00> : vector<10x128xf32>
    %6 = tpu.matmul %5, %1, %cst {dimension_numbers = #tpu.dot_dimension_numbers<[1], [0], [0], [1], [0, 0, 1, 1], [], []>} : vector<10x8xf32>, vector<8x128xf32>, vector<10x128xf32> -> vector<10x128xf32>
    %7 = arith.addf %6, %2 : vector<10x128xf32>
    %c0_9 = arith.constant 0 : index
    %c0_10 = arith.constant 0 : index
    %8 = vector.load %arg4[%c0_9, %c0_10] : memref<10x128xf32, #tpu.memory_space<vmem>>, vector<10x128xf32>
    tpu.vector_store %arg4[%c0_9, %c0_10], %7 {strides = array<i32>} : memref<10x128xf32, #tpu.memory_space<vmem>>, vector<10x128xf32>,
    %c0_11 = arith.constant 0 : index
    %c0_12 = arith.constant 0 : index
    %9 = vector.load %arg4[%c0_11, %c0_12] : memref<10x128xf32, #tpu.memory_space<vmem>>, vector<1x128xf32>
    %10 = math.tanh %9 : vector<1x128xf32>
    %cst_13 = arith.constant dense<0.000000e+00> : vector<1x128xf32>
    %11 = tpu.matmul %10, %0, %cst_13 {dimension_numbers = #tpu.dot_dimension_numbers<[1], [0], [0], [1], [0, 0, 1, 1], [], []>} : vector<1x128xf32>, vector<128x128xf32>, vector<1x128xf32> -> vector<1x128xf32>
    %c1 = arith.constant 1 : index
    %c0_14 = arith.constant 0 : index
    %12 = vector.load %arg4[%c1, %c0_14] : memref<10x128xf32, #tpu.memory_space<vmem>>, vector<1x128xf32>
    %13 = arith.addf %11, %12 : vector<1x128xf32>
    %14 = math.tanh %13 : vector<1x128xf32>
    %cst_15 = arith.constant dense<0.000000e+00> : vector<1x128xf32>
    %15 = tpu.matmul %14, %0, %cst_15 {dimension_numbers = #tpu.dot_dimension_numbers<[1], [0], [0], [1], [0, 0, 1, 1], [], []>} : vector<1x128xf32>, vector<128x128xf32>, vector<1x128xf32> -> vector<1x128xf32>
    %c2 = arith.constant 2 : index
    %c0_16 = arith.constant 0 : index
    %16 = vector.load %arg4[%c2, %c0_16] : memref<10x128xf32, #tpu.memory_space<vmem>>, vector<1x128xf32>
    %17 = arith.addf %15, %16 : vector<1x128xf32>
    %18 = math.tanh %17 : vector<1x128xf32>
    %c0_17 = arith.constant 0 : index
    %c0_18 = arith.constant 0 : index
    %19 = vector.load %arg5[%c0_17, %c0_18] : memref<8x128xf32, #tpu.memory_space<vmem>>, vector<1x128xf32>
    tpu.vector_store %arg5[%c0_17, %c0_18], %18 {strides = array<i32>} : memref<8x128xf32, #tpu.memory_space<vmem>>, vector<1x128xf32>,
    %cst_19 = arith.constant dense<0.000000e+00> : vector<1x128xf32>
    %20 = tpu.matmul %18, %0, %cst_19 {dimension_numbers = #tpu.dot_dimension_numbers<[1], [0], [0], [1], [0, 0, 1, 1], [], []>} : vector<1x128xf32>, vector<128x128xf32>, vector<1x128xf32> -> vector<1x128xf32>
    %c3 = arith.constant 3 : index
    %c0_20 = arith.constant 0 : index
    %21 = vector.load %arg4[%c3, %c0_20] : memref<10x128xf32, #tpu.memory_space<vmem>>, vector<1x128xf32>
    %22 = arith.addf %20, %21 : vector<1x128xf32>
    %23 = math.tanh %22 : vector<1x128xf32>
    %c1_21 = arith.constant 1 : index
    %c0_22 = arith.constant 0 : index
    %24 = vector.load %arg5[%c1_21, %c0_22] : memref<8x128xf32, #tpu.memory_space<vmem>>, vector<1x128xf32>
    tpu.vector_store %arg5[%c1_21, %c0_22], %23 {strides = array<i32>} : memref<8x128xf32, #tpu.memory_space<vmem>>, vector<1x128xf32>,
    %cst_23 = arith.constant dense<0.000000e+00> : vector<1x128xf32>
    %25 = tpu.matmul %23, %0, %cst_23 {dimension_numbers = #tpu.dot_dimension_numbers<[1], [0], [0], [1], [0, 0, 1, 1], [], []>} : vector<1x128xf32>, vector<128x128xf32>, vector<1x128xf32> -> vector<1x128xf32>
    %c4 = arith.constant 4 : index
    %c0_24 = arith.constant 0 : index
    %26 = vector.load %arg4[%c4, %c0_24] : memref<10x128xf32, #tpu.memory_space<vmem>>, vector<1x128xf32>
    %27 = arith.addf %25, %26 : vector<1x128xf32>
    %28 = math.tanh %27 : vector<1x128xf32>
    %c2_25 = arith.constant 2 : index
    %c0_26 = arith.constant 0 : index
    %29 = vector.load %arg5[%c2_25, %c0_26] : memref<8x128xf32, #tpu.memory_space<vmem>>, vector<1x128xf32>
    tpu.vector_store %arg5[%c2_25, %c0_26], %28 {strides = array<i32>} : memref<8x128xf32, #tpu.memory_space<vmem>>, vector<1x128xf32>,
    %cst_27 = arith.constant dense<0.000000e+00> : vector<1x128xf32>
    %30 = tpu.matmul %28, %0, %cst_27 {dimension_numbers = #tpu.dot_dimension_numbers<[1], [0], [0], [1], [0, 0, 1, 1], [], []>} : vector<1x128xf32>, vector<128x128xf32>, vector<1x128xf32> -> vector<1x128xf32>
    %c5 = arith.constant 5 : index
    %c0_28 = arith.constant 0 : index
    %31 = vector.load %arg4[%c5, %c0_28] : memref<10x128xf32, #tpu.memory_space<vmem>>, vector<1x128xf32>
    %32 = arith.addf %30, %31 : vector<1x128xf32>
    %33 = math.tanh %32 : vector<1x128xf32>
    %c3_29 = arith.constant 3 : index
    %c0_30 = arith.constant 0 : index
    %34 = vector.load %arg5[%c3_29, %c0_30] : memref<8x128xf32, #tpu.memory_space<vmem>>, vector<1x128xf32>
    tpu.vector_store %arg5[%c3_29, %c0_30], %33 {strides = array<i32>} : memref<8x128xf32, #tpu.memory_space<vmem>>, vector<1x128xf32>,
    %cst_31 = arith.constant dense<0.000000e+00> : vector<1x128xf32>
    %35 = tpu.matmul %33, %0, %cst_31 {dimension_numbers = #tpu.dot_dimension_numbers<[1], [0], [0], [1], [0, 0, 1, 1], [], []>} : vector<1x128xf32>, vector<128x128xf32>, vector<1x128xf32> -> vector<1x128xf32>
    %c6 = arith.constant 6 : index
    %c0_32 = arith.constant 0 : index
    %36 = vector.load %arg4[%c6, %c0_32] : memref<10x128xf32, #tpu.memory_space<vmem>>, vector<1x128xf32>
    %37 = arith.addf %35, %36 : vector<1x128xf32>
    %38 = math.tanh %37 : vector<1x128xf32>
    %c4_33 = arith.constant 4 : index
    %c0_34 = arith.constant 0 : index
    %39 = vector.load %arg5[%c4_33, %c0_34] : memref<8x128xf32, #tpu.memory_space<vmem>>, vector<1x128xf32>
    tpu.vector_store %arg5[%c4_33, %c0_34], %38 {strides = array<i32>} : memref<8x128xf32, #tpu.memory_space<vmem>>, vector<1x128xf32>,
    %cst_35 = arith.constant dense<0.000000e+00> : vector<1x128xf32>
    %40 = tpu.matmul %38, %0, %cst_35 {dimension_numbers = #tpu.dot_dimension_numbers<[1], [0], [0], [1], [0, 0, 1, 1], [], []>} : vector<1x128xf32>, vector<128x128xf32>, vector<1x128xf32> -> vector<1x128xf32>
    %c7 = arith.constant 7 : index
    %c0_36 = arith.constant 0 : index
    %41 = vector.load %arg4[%c7, %c0_36] : memref<10x128xf32, #tpu.memory_space<vmem>>, vector<1x128xf32>
    %42 = arith.addf %40, %41 : vector<1x128xf32>
    %43 = math.tanh %42 : vector<1x128xf32>
    %c5_37 = arith.constant 5 : index
    %c0_38 = arith.constant 0 : index
    %44 = vector.load %arg5[%c5_37, %c0_38] : memref<8x128xf32, #tpu.memory_space<vmem>>, vector<1x128xf32>
    tpu.vector_store %arg5[%c5_37, %c0_38], %43 {strides = array<i32>} : memref<8x128xf32, #tpu.memory_space<vmem>>, vector<1x128xf32>,
    %cst_39 = arith.constant dense<0.000000e+00> : vector<1x128xf32>
    %45 = tpu.matmul %43, %0, %cst_39 {dimension_numbers = #tpu.dot_dimension_numbers<[1], [0], [0], [1], [0, 0, 1, 1], [], []>} : vector<1x128xf32>, vector<128x128xf32>, vector<1x128xf32> -> vector<1x128xf32>
    %c8 = arith.constant 8 : index
    %c0_40 = arith.constant 0 : index
    %46 = vector.load %arg4[%c8, %c0_40] : memref<10x128xf32, #tpu.memory_space<vmem>>, vector<1x128xf32>
    %47 = arith.addf %45, %46 : vector<1x128xf32>
    %48 = math.tanh %47 : vector<1x128xf32>
    %c6_41 = arith.constant 6 : index
    %c0_42 = arith.constant 0 : index
    %49 = vector.load %arg5[%c6_41, %c0_42] : memref<8x128xf32, #tpu.memory_space<vmem>>, vector<1x128xf32>
    tpu.vector_store %arg5[%c6_41, %c0_42], %48 {strides = array<i32>} : memref<8x128xf32, #tpu.memory_space<vmem>>, vector<1x128xf32>,
    %cst_43 = arith.constant dense<0.000000e+00> : vector<1x128xf32>
    %50 = tpu.matmul %48, %0, %cst_43 {dimension_numbers = #tpu.dot_dimension_numbers<[1], [0], [0], [1], [0, 0, 1, 1], [], []>} : vector<1x128xf32>, vector<128x128xf32>, vector<1x128xf32> -> vector<1x128xf32>
    %c9 = arith.constant 9 : index
    %c0_44 = arith.constant 0 : index
    %51 = vector.load %arg4[%c9, %c0_44] : memref<10x128xf32, #tpu.memory_space<vmem>>, vector<1x128xf32>
    %52 = arith.addf %50, %51 : vector<1x128xf32>
    %53 = math.tanh %52 : vector<1x128xf32>
    %c7_45 = arith.constant 7 : index
    %c0_46 = arith.constant 0 : index
    %54 = vector.load %arg5[%c7_45, %c0_46] : memref<8x128xf32, #tpu.memory_space<vmem>>, vector<1x128xf32>
    tpu.vector_store %arg5[%c7_45, %c0_46], %53 {strides = array<i32>} : memref<8x128xf32, #tpu.memory_space<vmem>>, vector<1x128xf32>,
    %c0_47 = arith.constant 0 : index
    %c0_48 = arith.constant 0 : index
    %55 = vector.load %arg5[%c0_47, %c0_48] : memref<8x128xf32, #tpu.memory_space<vmem>>, vector<8x128xf32>
    %cst_49 = arith.constant dense<0.000000e+00> : vector<8x4xf32>
    %56 = tpu.matmul %55, %3, %cst_49 {dimension_numbers = #tpu.dot_dimension_numbers<[1], [0], [0], [1], [0, 0, 1, 1], [], []>} : vector<8x128xf32>, vector<128x4xf32>, vector<8x4xf32> -> vector<8x4xf32>
    %57 = vector.broadcast %4 : vector<1x4xf32> to vector<8x4xf32>
    %58 = arith.addf %56, %57 : vector<8x4xf32>
    %c0_50 = arith.constant 0 : index
    %c0_51 = arith.constant 0 : index
    %59 = vector.load %arg3[%c0_50, %c0_51] : memref<8x4xf32, #tpu.memory_space<vmem>>, vector<8x4xf32>
    tpu.vector_store %arg3[%c0_50, %c0_51], %58 {strides = array<i32>} : memref<8x4xf32, #tpu.memory_space<vmem>>, vector<8x4xf32>,
    return
  }
}

</mosaic_0001>

<bundles_post_ra>
// kernel: tpu_custom_call.1
= control target key start
LH: loop header
LB: loop body
LE: loop exit
PB: predicated region body
PF: predicated region fallthrough
CT: control target
= control target key end

     0   :  { %vm52_vm0 = vcmask 64512   ;;  %v1669_v3 = vmov 0.0|0.0   ;;  %vm1670_vm1 = vmmov 0   ;;  %v1671_v21 = vmov 0.0   ;;  %s1997_s1 = inlined_call_operand.vmem [shape: f32[146,128], index: 1, kind: input, shape index: {}]   ;;  %s1998_s0 = inlined_call_operand.vmem [shape: f32[10,8], index: 0, kind: input, shape index: {}]   ;;  %s1999_s2 = inlined_call_operand.vmem [shape: f32[136,4], index: 2, kind: input, shape index: {}]   ;;  %s2000_s3 = inlined_call_operand.vmem [shape: f32[8,4], index: 3, kind: output, shape index: {}]  }
   0x1   :  { %v30_v0 = vld [vmem:[%s1997_s1 + $0x80] sm:$0xff]  ;;  %v51_v2 = vld [vmem:[%s1998_s0 + $0x8] sm:$0x3]  ;;  %1406 = vmatprep.subr.bf16.mxu1 %v1669_v3  ;;  %v16_v6 = vld [vmem:[%s1997_s1 + $0x10] sm:$0xff]  ;;  %1088 = vmatprep.mubr.msk.f32.mxu1 %vm1670_vm1, %v1671_v21  ;;  %vm869_vm2 = vcmask 31744  }
   0x2   :  { %v50_v1 = vld [vmem:[%s1998_s0] sm:$0xff]  ;;  %1051 = vmatprep.subr.mxu0 %v30_v0  ;;  %v15_v5 = vld [vmem:[%s1997_s1 + $0x8] sm:$0xff]  ;;  %v17_v8 = vld [vmem:[%s1997_s1 + $0x18] sm:$0xff] }
   0x3   :  { %1053 = vmatprep.mubr.msk.f32.mxu0 %vm52_vm0, %v50_v1  ;;  %v14_v4 = vld [vmem:[%s1997_s1] sm:$0xff]  ;;  %1052 = vmatpush3.msra.mxu0 %v30_v0  ;;  %v1718_v9 = vpack.c.bf16 %v17_v8, %v16_v6  ;;  %v19_v11 = vld [vmem:[%s1997_s1 + $0x28] sm:$0xff]  ;;  %v20_v13 = vld [vmem:[%s1997_s1 + $0x30] sm:$0xff] }
   0x4   :  { %v1711_v7 = vpack.c.bf16 %v15_v5, %v14_v4  ;;  %1054 = vmatmul.mubr.msk.f32.vlgmr.msra.gmra.mrb[0].mxu0 %vm52_vm0, %v51_v2  ;;  %1430 = vmatprep.subr.bf16.mxu0 %v1669_v3  ;;  %v18_v10 = vld [vmem:[%s1997_s1 + $0x20] sm:$0xff]  ;;  %v21_v14 = vld [vmem:[%s1997_s1 + $0x38] sm:$0xff]  ;;  %v23_v17 = vld [vmem:[%s1997_s1 + $0x48] sm:$0xff] }
   0x5   :  { %v1733_v12 = vpack.c.bf16 %v19_v11, %v18_v10  ;;  %v1745_v15 = vpack.c.bf16 %v21_v14, %v20_v13  ;;  %v22_v16 = vld [vmem:[%s1997_s1 + $0x40] sm:$0xff]  ;;  %v24_v19 = vld [vmem:[%s1997_s1 + $0x50] sm:$0xff]  ;;  %v25_v20 = vld [vmem:[%s1997_s1 + $0x58] sm:$0xff]  ;;  %1123 = vmatprep.mubr.msk.f32.mxu0 %vm1670_vm1, %v1671_v21 }
   0x6   :  { %1408 = vmatpush3.bf16.msra.mxu1 %v1711_v7  ;;  %1432 = vmatpush3.bf16.msra.mxu0 %v1711_v7  ;;  %v1756_v18 = vpack.c.bf16 %v23_v17, %v22_v16  ;;  %v1770_v22 = vpack.c.bf16 %v25_v20, %v24_v19  ;;  %v26_v23 = vld [vmem:[%s1997_s1 + $0x60] sm:$0xff]  ;;  %v27_v24 = vld [vmem:[%s1997_s1 + $0x68] sm:$0xff]  ;;  %v28_v26 = vld [vmem:[%s1997_s1 + $0x70] sm:$0xff] }
   0x7   :  { %1409 = vmatprep.subr.bf16.mxu1 %v1669_v3  ;;  %1433 = vmatprep.subr.bf16.mxu0 %v1669_v3  ;;  %v1782_v25 = vpack.c.bf16 %v27_v24, %v26_v23  ;;  %v29_v27 = vld [vmem:[%s1997_s1 + $0x78] sm:$0xff]  ;;  %v32_v29 = vld [vmem:[%s1997_s1 + $0x90] sm:$0x3]  ;;  %v31_v30 = vld [vmem:[%s1997_s1 + $0x88] sm:$0xff] }
   0x8   :  { %v1794_v28 = vpack.c.bf16 %v29_v27, %v28_v26  ;;  %v34_v10 = vld [vmem:[%s1999_s2 + $0x8] sm:$0xff]  ;;  %v35_v11 = vld [vmem:[%s1999_s2 + $0x10] sm:$0xff]  ;;  %v36_v13 = vld [vmem:[%s1999_s2 + $0x18] sm:$0xff] }
   0x9   :  { %v1626_v14 = vpack.c.bf16 %v36_v13, %v35_v11  ;;  %v38_v16 = vld [vmem:[%s1999_s2 + $0x28] sm:$0xff]  ;;  %v39_v23 = vld [vmem:[%s1999_s2 + $0x30] sm:$0xff]  ;;  %v40_v24 = vld [vmem:[%s1999_s2 + $0x38] sm:$0xff] }
   0xa   :  { %1411 = vmatpush3.bf16.msra.mxu1 %v1718_v9  ;;  %1435 = vmatpush3.bf16.msra.mxu0 %v1718_v9  ;;  %v41_v26 = vld [vmem:[%s1999_s2 + $0x40] sm:$0xff]  ;;  %v42_v27 = vld [vmem:[%s1999_s2 + $0x48] sm:$0xff] }
   0xb   :  { %1412 = vmatprep.subr.bf16.mxu1 %v1669_v3  ;;  %1436 = vmatprep.subr.bf16.mxu0 %v1669_v3 }
   0xe   :  { %1414 = vmatpush3.bf16.msra.mxu1 %v1733_v12  ;;  %1438 = vmatpush3.bf16.msra.mxu0 %v1733_v12 }
   0xf   :  { %1415 = vmatprep.subr.bf16.mxu1 %v1669_v3  ;;  %1439 = vmatprep.subr.bf16.mxu0 %v1669_v3 }
  0x12   :  { %1417 = vmatpush3.bf16.msra.mxu1 %v1745_v15  ;;  %1441 = vmatpush3.bf16.msra.mxu0 %v1745_v15 }
  0x13   :  { %1418 = vmatprep.subr.bf16.mxu1 %v1669_v3  ;;  %1442 = vmatprep.subr.bf16.mxu0 %v1669_v3 }
  0x16   :  { %1420 = vmatpush3.bf16.msra.mxu1 %v1756_v18  ;;  %1444 = vmatpush3.bf16.msra.mxu0 %v1756_v18 }
  0x17   :  { %1421 = vmatprep.subr.bf16.mxu1 %v1669_v3  ;;  %1445 = vmatprep.subr.bf16.mxu0 %v1669_v3 }
  0x1a   :  { %1423 = vmatpush3.bf16.msra.mxu1 %v1770_v22  ;;  %1447 = vmatpush3.bf16.msra.mxu0 %v1770_v22 }
  0x1b   :  { %1424 = vmatprep.subr.bf16.mxu1 %v1669_v3  ;;  %1448 = vmatprep.subr.bf16.mxu0 %v1669_v3 }
  0x1e   :  { %1426 = vmatpush3.bf16.msra.mxu1 %v1782_v25  ;;  %1450 = vmatpush3.bf16.msra.mxu0 %v1782_v25 }
  0x1f   :  { %1427 = vmatprep.subr.bf16.mxu1 %v1669_v3  ;;  %1451 = vmatprep.subr.bf16.mxu0 %v1669_v3 }
  0x22   :  { %1429 = vmatpush3.bf16.msra.mxu1 %v1794_v28  ;;  %1453 = vmatpush3.bf16.msra.mxu0 %v1794_v28 }
  0x23   :  { %1454 = vmatprep.subr.bf16.mxu1 %v1669_v3  ;;  %1478 = vmatprep.subr.bf16.mxu0 %v1669_v3 }
  0xd7   :  { %v1055_v31 = vpop.f32.mrb[0].mxu0 }
  0xd8   :  { %v131_v32 = vadd.f32 %v1055_v31, %v32_v29  ;;  %v125_v33 = vpop.f32.mrb[1].mxu0  ;;  %v43_v29 = vld [vmem:[%s1999_s2 + $0x50] sm:$0xff] }
  0xd9   :  { %v126_v34 = vadd.f32 %v125_v33, %v31_v30  ;;  %v44_v30 = vld [vmem:[%s1999_s2 + $0x58] sm:$0xff]  ;;  %v46_v33 = vld [vmem:[%s1999_s2 + $0x68] sm:$0xff] }
  0xda   :  { %135 = vst [vmem:[#allocation2 + $0x8] sm:$0x3] %v131_v32  ;;  %v1638_v31 = vpack.c.bf16 %v44_v30, %v43_v29  ;;  %v45_v32 = vld [vmem:[%s1999_s2 + $0x60] sm:$0xff] }
  0xdb   :  { %134 = vst [vmem:[#allocation2] sm:$0xff] %v126_v34  ;;  %v47_v34 = vld [vmem:[%s1999_s2 + $0x70] sm:$0xff] }
  0xe2   :  { %v136_v35 = vld [vmem:[#allocation2] sm:$0x1]  ;;  %v138_v37 = vld [vmem:[#allocation2 + $0x1] sm:$0x1]  ;;  %v210_v42 = vld [vmem:[#allocation2 + $0x2] sm:$0x1] }
  0xe3   :  { %1649 = vtanh.f32 %v136_v35  ;;  %v283_v47 = vld [vmem:[#allocation2 + $0x3] sm:$0x1]  ;;  %v356_v52 = vld [vmem:[#allocation2 + $0x4] sm:$0x1]  ;;  %v429_v57 = vld [vmem:[#allocation2 + $0x5] sm:$0x1]  ;;  %v1641_v35 = vpack.c.bf16 %v46_v33, %v45_v32 }
  0xe4   :  { %v502_v62 = vld [vmem:[#allocation2 + $0x6] sm:$0x1]  ;;  %v575_v4 = vld [vmem:[#allocation2 + $0x7] sm:$0x1] }
  0xed   :  { %v1650_v36 = vpop.eup %1649 }
  0xee   :  { %1089 = vmatmul.mubr.f32.vlgmr.msra.gmra.mrb[0].mxu1 %v1650_v36  ;;  %v48_v36 = vld [vmem:[%s1999_s2 + $0x78] sm:$0xff] }
  0xef   :  { %1456 = vmatpush3.bf16.msra.mxu1 %v1711_v7  ;;  %1158 = vmatprep.mubr.msk.f32.mxu1 %vm1670_vm1, %v1671_v21 }
  0xf0   :  { %1457 = vmatprep.subr.bf16.mxu1 %v1669_v3 }
  0xf3   :  { %1459 = vmatpush3.bf16.msra.mxu1 %v1718_v9 }
  0xf4   :  { %1460 = vmatprep.subr.bf16.mxu1 %v1669_v3 }
  0xf7   :  { %1462 = vmatpush3.bf16.msra.mxu1 %v1733_v12 }
  0xf8   :  { %1463 = vmatprep.subr.bf16.mxu1 %v1669_v3 }
  0xfb   :  { %1465 = vmatpush3.bf16.msra.mxu1 %v1745_v15 }
  0xfc   :  { %1466 = vmatprep.subr.bf16.mxu1 %v1669_v3 }
  0xff   :  { %1468 = vmatpush3.bf16.msra.mxu1 %v1756_v18 }
 0x100   :  { %1469 = vmatprep.subr.bf16.mxu1 %v1669_v3 }
 0x103   :  { %1471 = vmatpush3.bf16.msra.mxu1 %v1770_v22 }
 0x104   :  { %1472 = vmatprep.subr.bf16.mxu1 %v1669_v3 }
 0x107   :  { %1474 = vmatpush3.bf16.msra.mxu1 %v1782_v25 }
 0x108   :  { %1475 = vmatprep.subr.bf16.mxu1 %v1669_v3 }
 0x10b   :  { %1477 = vmatpush3.bf16.msra.mxu1 %v1794_v28 }
 0x10c   :  { %1502 = vmatprep.subr.bf16.mxu1 %v1669_v3 }
 0x1c1   :  { %v205_v38 = vpop.f32.mrb[0].mxu1 }
 0x1c2   :  { %v206_v39 = vadd.f32 %v205_v38, %v138_v37  ;;  %v1090_v40 = vpop.f32.mrb[1].mxu1  ;;  %v1644_v37 = vpack.c.bf16 %v48_v36, %v47_v34  ;;  %v721_v38 = vld [vmem:[#allocation2 + $0x9] sm:$0x1] }
 0x1c4   :  { %1651 = vtanh.f32 %v206_v39 }
 0x1ce   :  { %v1652_v41 = vpop.eup %1651 }
 0x1cf   :  { %1124 = vmatmul.mubr.f32.vlgmr.msra.gmra.mrb[2].mxu0 %v1652_v41 }
 0x1d0   :  { %1480 = vmatpush3.bf16.msra.mxu0 %v1711_v7  ;;  %1193 = vmatprep.mubr.msk.f32.mxu0 %vm1670_vm1, %v1671_v21 }
 0x1d1   :  { %1481 = vmatprep.subr.bf16.mxu0 %v1669_v3 }
 0x1d4   :  { %1483 = vmatpush3.bf16.msra.mxu0 %v1718_v9 }
 0x1d5   :  { %1484 = vmatprep.subr.bf16.mxu0 %v1669_v3 }
 0x1d8   :  { %1486 = vmatpush3.bf16.msra.mxu0 %v1733_v12 }
 0x1d9   :  { %1487 = vmatprep.subr.bf16.mxu0 %v1669_v3 }
 0x1dc   :  { %1489 = vmatpush3.bf16.msra.mxu0 %v1745_v15 }
 0x1dd   :  { %1490 = vmatprep.subr.bf16.mxu0 %v1669_v3 }
 0x1e0   :  { %1492 = vmatpush3.bf16.msra.mxu0 %v1756_v18 }
 0x1e1   :  { %1493 = vmatprep.subr.bf16.mxu0 %v1669_v3 }
 0x1e4   :  { %1495 = vmatpush3.bf16.msra.mxu0 %v1770_v22 }
 0x1e5   :  { %1496 = vmatprep.subr.bf16.mxu0 %v1669_v3 }
 0x1e8   :  { %1498 = vmatpush3.bf16.msra.mxu0 %v1782_v25 }
 0x1e9   :  { %1499 = vmatprep.subr.bf16.mxu0 %v1669_v3 }
 0x1ec   :  { %1501 = vmatpush3.bf16.msra.mxu0 %v1794_v28 }
 0x1ed   :  { %1526 = vmatprep.subr.bf16.mxu0 %v1669_v3 }
 0x2a2   :  { %v277_v43 = vpop.f32.mrb[2].mxu0 }
 0x2a3   :  { %v278_v44 = vadd.f32 %v277_v43, %v210_v42  ;;  %v1125_v45 = vpop.f32.mrb[3].mxu0 }
 0x2a5   :  { %1653 = vtanh.f32 %v278_v44  ;;  %v877_v44 = vld [vmem:[%s1999_s2 + $0x80] ss:$0 sm:$0xff] }
 0x2af   :  { %v1654_v46 = vpop.eup %1653 }
 0x2b0   :  { %282 = vst [vmem:[#allocation3] sm:$0x1] %v1654_v46  ;;  %1159 = vmatmul.mubr.f32.vlgmr.msra.gmra.mrb[2].mxu1 %v1654_v46 }
 0x2b1   :  { %1504 = vmatpush3.bf16.msra.mxu1 %v1711_v7  ;;  %1228 = vmatprep.mubr.msk.f32.mxu1 %vm1670_vm1, %v1671_v21 }
 0x2b2   :  { %1505 = vmatprep.subr.bf16.mxu1 %v1669_v3 }
 0x2b5   :  { %1507 = vmatpush3.bf16.msra.mxu1 %v1718_v9 }
 0x2b6   :  { %1508 = vmatprep.subr.bf16.mxu1 %v1669_v3 }
 0x2b9   :  { %1510 = vmatpush3.bf16.msra.mxu1 %v1733_v12 }
 0x2ba   :  { %1511 = vmatprep.subr.bf16.mxu1 %v1669_v3 }
 0x2bd   :  { %1513 = vmatpush3.bf16.msra.mxu1 %v1745_v15 }
 0x2be   :  { %1514 = vmatprep.subr.bf16.mxu1 %v1669_v3 }
 0x2c1   :  { %1516 = vmatpush3.bf16.msra.mxu1 %v1756_v18 }
 0x2c2   :  { %1517 = vmatprep.subr.bf16.mxu1 %v1669_v3 }
 0x2c5   :  { %1519 = vmatpush3.bf16.msra.mxu1 %v1770_v22 }
 0x2c6   :  { %1520 = vmatprep.subr.bf16.mxu1 %v1669_v3 }
 0x2c9   :  { %1522 = vmatpush3.bf16.msra.mxu1 %v1782_v25 }
 0x2ca   :  { %1523 = vmatprep.subr.bf16.mxu1 %v1669_v3 }
 0x2cd   :  { %1525 = vmatpush3.bf16.msra.mxu1 %v1794_v28 }
 0x2ce   :  { %1550 = vmatprep.subr.bf16.mxu1 %v1669_v3 }
 0x383   :  { %v350_v48 = vpop.f32.mrb[2].mxu1 }
 0x384   :  { %v351_v49 = vadd.f32 %v350_v48, %v283_v47  ;;  %v1160_v50 = vpop.f32.mrb[3].mxu1 }
 0x386   :  { %1655 = vtanh.f32 %v351_v49 }
 0x390   :  { %v1656_v51 = vpop.eup %1655 }
 0x391   :  { %355 = vst [vmem:[#allocation3 + $0x1] sm:$0x1] %v1656_v51  ;;  %1194 = vmatmul.mubr.f32.vlgmr.msra.gmra.mrb[4].mxu0 %v1656_v51 }
 0x392   :  { %1528 = vmatpush3.bf16.msra.mxu0 %v1711_v7  ;;  %1263 = vmatprep.mubr.msk.f32.mxu0 %vm1670_vm1, %v1671_v21 }
 0x393   :  { %1529 = vmatprep.subr.bf16.mxu0 %v1669_v3 }
 0x396   :  { %1531 = vmatpush3.bf16.msra.mxu0 %v1718_v9 }
 0x397   :  { %1532 = vmatprep.subr.bf16.mxu0 %v1669_v3 }
 0x39a   :  { %1534 = vmatpush3.bf16.msra.mxu0 %v1733_v12 }
 0x39b   :  { %1535 = vmatprep.subr.bf16.mxu0 %v1669_v3 }
 0x39e   :  { %1537 = vmatpush3.bf16.msra.mxu0 %v1745_v15 }
 0x39f   :  { %1538 = vmatprep.subr.bf16.mxu0 %v1669_v3 }
 0x3a2   :  { %1540 = vmatpush3.bf16.msra.mxu0 %v1756_v18 }
 0x3a3   :  { %1541 = vmatprep.subr.bf16.mxu0 %v1669_v3 }
 0x3a6   :  { %1543 = vmatpush3.bf16.msra.mxu0 %v1770_v22 }
 0x3a7   :  { %1544 = vmatprep.subr.bf16.mxu0 %v1669_v3 }
 0x3aa   :  { %1546 = vmatpush3.bf16.msra.mxu0 %v1782_v25 }
 0x3ab   :  { %1547 = vmatprep.subr.bf16.mxu0 %v1669_v3 }
 0x3ae   :  { %1549 = vmatpush3.bf16.msra.mxu0 %v1794_v28 }
 0x3af   :  { %1574 = vmatprep.subr.bf16.mxu0 %v1669_v3 }
 0x464   :  { %v423_v53 = vpop.f32.mrb[4].mxu0 }
 0x465   :  { %v424_v54 = vadd.f32 %v423_v53, %v356_v52  ;;  %v1195_v55 = vpop.f32.mrb[5].mxu0 }
 0x467   :  { %1657 = vtanh.f32 %v424_v54 }
 0x471   :  { %v1658_v56 = vpop.eup %1657 }
 0x472   :  { %428 = vst [vmem:[#allocation3 + $0x2] sm:$0x1] %v1658_v56  ;;  %1229 = vmatmul.mubr.f32.vlgmr.msra.gmra.mrb[4].mxu1 %v1658_v56 }
 0x473   :  { %1552 = vmatpush3.bf16.msra.mxu1 %v1711_v7  ;;  %1298 = vmatprep.mubr.msk.f32.mxu1 %vm1670_vm1, %v1671_v21 }
 0x474   :  { %1553 = vmatprep.subr.bf16.mxu1 %v1669_v3 }
 0x477   :  { %1555 = vmatpush3.bf16.msra.mxu1 %v1718_v9 }
 0x478   :  { %1556 = vmatprep.subr.bf16.mxu1 %v1669_v3 }
 0x47b   :  { %1558 = vmatpush3.bf16.msra.mxu1 %v1733_v12 }
 0x47c   :  { %1559 = vmatprep.subr.bf16.mxu1 %v1669_v3 }
 0x47f   :  { %1561 = vmatpush3.bf16.msra.mxu1 %v1745_v15 }
 0x480   :  { %1562 = vmatprep.subr.bf16.mxu1 %v1669_v3 }
 0x483   :  { %1564 = vmatpush3.bf16.msra.mxu1 %v1756_v18 }
 0x484   :  { %1565 = vmatprep.subr.bf16.mxu1 %v1669_v3 }
 0x487   :  { %1567 = vmatpush3.bf16.msra.mxu1 %v1770_v22 }
 0x488   :  { %1568 = vmatprep.subr.bf16.mxu1 %v1669_v3 }
 0x48b   :  { %1570 = vmatpush3.bf16.msra.mxu1 %v1782_v25 }
 0x48c   :  { %1571 = vmatprep.subr.bf16.mxu1 %v1669_v3 }
 0x48f   :  { %1573 = vmatpush3.bf16.msra.mxu1 %v1794_v28 }
 0x490   :  { %1598 = vmatprep.subr.bf16.mxu1 %v1669_v3 }
 0x545   :  { %v496_v58 = vpop.f32.mrb[4].mxu1 }
 0x546   :  { %v497_v59 = vadd.f32 %v496_v58, %v429_v57  ;;  %v1230_v60 = vpop.f32.mrb[5].mxu1 }
 0x548   :  { %1659 = vtanh.f32 %v497_v59 }
 0x552   :  { %v1660_v61 = vpop.eup %1659 }
 0x553   :  { %501 = vst [vmem:[#allocation3 + $0x3] sm:$0x1] %v1660_v61  ;;  %1264 = vmatmul.mubr.f32.vlgmr.msra.gmra.mrb[6].mxu0 %v1660_v61 }
 0x554   :  { %1576 = vmatpush3.bf16.msra.mxu0 %v1711_v7  ;;  %1333 = vmatprep.mubr.msk.f32.mxu0 %vm1670_vm1, %v1671_v21 }
 0x555   :  { %1577 = vmatprep.subr.bf16.mxu0 %v1669_v3 }
 0x558   :  { %1579 = vmatpush3.bf16.msra.mxu0 %v1718_v9 }
 0x559   :  { %1580 = vmatprep.subr.bf16.mxu0 %v1669_v3 }
 0x55c   :  { %1582 = vmatpush3.bf16.msra.mxu0 %v1733_v12 }
 0x55d   :  { %1583 = vmatprep.subr.bf16.mxu0 %v1669_v3 }
 0x560   :  { %1585 = vmatpush3.bf16.msra.mxu0 %v1745_v15 }
 0x561   :  { %1586 = vmatprep.subr.bf16.mxu0 %v1669_v3 }
 0x564   :  { %1588 = vmatpush3.bf16.msra.mxu0 %v1756_v18 }
 0x565   :  { %1589 = vmatprep.subr.bf16.mxu0 %v1669_v3 }
 0x568   :  { %1591 = vmatpush3.bf16.msra.mxu0 %v1770_v22 }
 0x569   :  { %1592 = vmatprep.subr.bf16.mxu0 %v1669_v3 }
 0x56c   :  { %1594 = vmatpush3.bf16.msra.mxu0 %v1782_v25 }
 0x56d   :  { %1595 = vmatprep.subr.bf16.mxu0 %v1669_v3 }
 0x570   :  { %1597 = vmatpush3.bf16.msra.mxu0 %v1794_v28 }
 0x571   :  { %1622 = vmatprep.subr.bf16.mxu0 %v1669_v3 }
 0x626   :  { %v569_v63 = vpop.f32.mrb[6].mxu0 }
 0x627   :  { %v570_v0 = vadd.f32 %v569_v63, %v502_v62  ;;  %v1265_v1 = vpop.f32.mrb[7].mxu0 }
 0x629   :  { %1661 = vtanh.f32 %v570_v0 }
 0x633   :  { %v1662_v2 = vpop.eup %1661 }
 0x634   :  { %574 = vst [vmem:[#allocation3 + $0x4] sm:$0x1] %v1662_v2  ;;  %1299 = vmatmul.mubr.f32.vlgmr.msra.gmra.mrb[6].mxu1 %v1662_v2 }
 0x635   :  { %1600 = vmatpush3.bf16.msra.mxu1 %v1711_v7  ;;  %1368 = vmatprep.mubr.msk.f32.mxu1 %vm1670_vm1, %v1671_v21 }
 0x636   :  { %1601 = vmatprep.subr.bf16.mxu1 %v1669_v3 }
 0x639   :  { %1603 = vmatpush3.bf16.msra.mxu1 %v1718_v9  ;;  %v33_v9 = vld [vmem:[%s1999_s2] sm:$0xff] }
 0x63a   :  { %1604 = vmatprep.subr.bf16.mxu1 %v1669_v3 }
 0x63d   :  { %1606 = vmatpush3.bf16.msra.mxu1 %v1733_v12  ;;  %v1623_v12 = vpack.c.bf16 %v34_v10, %v33_v9 }
 0x63e   :  { %1607 = vmatprep.subr.bf16.mxu1 %v1669_v3 }
 0x641   :  { %1609 = vmatpush3.bf16.msra.mxu1 %v1745_v15  ;;  %v37_v15 = vld [vmem:[%s1999_s2 + $0x20] sm:$0xff] }
 0x642   :  { %1610 = vmatprep.subr.bf16.mxu1 %v1669_v3  ;;  %v1629_v17 = vpack.c.bf16 %v38_v16, %v37_v15 }
 0x645   :  { %1612 = vmatpush3.bf16.msra.mxu1 %v1756_v18  ;;  %v648_v18 = vld [vmem:[#allocation2 + $0x8] sm:$0x1] }
 0x646   :  { %1613 = vmatprep.subr.bf16.mxu1 %v1669_v3 }
 0x649   :  { %1615 = vmatpush3.bf16.msra.mxu1 %v1770_v22 }
 0x64a   :  { %1616 = vmatprep.subr.bf16.mxu1 %v1669_v3 }
 0x64d   :  { %1618 = vmatpush3.bf16.msra.mxu1 %v1782_v25  ;;  %v1632_v25 = vpack.c.bf16 %v40_v24, %v39_v23 }
 0x64e   :  { %1619 = vmatprep.subr.bf16.mxu1 %v1669_v3 }
 0x651   :  { %1621 = vmatpush3.bf16.msra.mxu1 %v1794_v28  ;;  %v1635_v28 = vpack.c.bf16 %v42_v27, %v41_v26 }
 0x707   :  { %v642_v5 = vpop.f32.mrb[6].mxu1 }
 0x708   :  { %v643_v6 = vadd.f32 %v642_v5, %v575_v4  ;;  %v1300_v7 = vpop.f32.mrb[7].mxu1 }
 0x70a   :  { %1663 = vtanh.f32 %v643_v6 }
 0x714   :  { %v1664_v8 = vpop.eup %1663 }
 0x715   :  { %647 = vst [vmem:[#allocation3 + $0x5] sm:$0x1] %v1664_v8  ;;  %1334 = vmatmul.mubr.f32.vlgmr.msra.gmra.mrb[8].mxu0 %v1664_v8 }
 0x716   :  { %1403 = vmatprep.mubr.msk.f32.mxu0 %vm1670_vm1, %v1671_v21  ;;  %1624 = vmatpush3.bf16.msra.mxu0 %v1623_v12 }
 0x717   :  { %1625 = vmatprep.subr.bf16.mxu0 %v1669_v3 }
 0x71a   :  { %1627 = vmatpush3.bf16.msra.mxu0 %v1626_v14 }
 0x71b   :  { %1628 = vmatprep.subr.bf16.mxu0 %v1669_v3 }
 0x71e   :  { %1630 = vmatpush3.bf16.msra.mxu0 %v1629_v17 }
 0x71f   :  { %1631 = vmatprep.subr.bf16.mxu0 %v1669_v3 }
 0x722   :  { %1633 = vmatpush3.bf16.msra.mxu0 %v1632_v25 }
 0x723   :  { %1634 = vmatprep.subr.bf16.mxu0 %v1669_v3 }
 0x726   :  { %1636 = vmatpush3.bf16.msra.mxu0 %v1635_v28 }
 0x727   :  { %1637 = vmatprep.subr.bf16.mxu0 %v1669_v3 }
 0x72a   :  { %1639 = vmatpush3.bf16.msra.mxu0 %v1638_v31 }
 0x72b   :  { %1640 = vmatprep.subr.bf16.mxu0 %v1669_v3 }
 0x72e   :  { %1642 = vmatpush3.bf16.msra.mxu0 %v1641_v35 }
 0x72f   :  { %1643 = vmatprep.subr.bf16.mxu0 %v1669_v3 }
 0x732   :  { %1645 = vmatpush3.bf16.msra.mxu0 %v1644_v37 }
 0x7e8   :  { %v715_v19 = vpop.f32.mrb[8].mxu0 }
 0x7e9   :  { %v716_v20 = vadd.f32 %v715_v19, %v648_v18  ;;  %v1335_v21 = vpop.f32.mrb[9].mxu0 }
 0x7eb   :  { %1665 = vtanh.f32 %v716_v20 }
 0x7f5   :  { %v1666_v22 = vpop.eup %1665 }
 0x7f6   :  { %720 = vst [vmem:[#allocation3 + $0x6] sm:$0x1] %v1666_v22  ;;  %1369 = vmatmul.mubr.f32.vlgmr.msra.gmra.mrb[8].mxu1 %v1666_v22 }
 0x8c9   :  { %v788_v39 = vpop.f32.mrb[8].mxu1 }
 0x8ca   :  { %v789_v40 = vadd.f32 %v788_v39, %v721_v38  ;;  %v1370_v41 = vpop.f32.mrb[9].mxu1 }
 0x8cc   :  { %1667 = vtanh.f32 %v789_v40 }
 0x8d6   :  { %v1668_v42 = vpop.eup %1667 }
 0x8d7   :  { %793 = vst [vmem:[#allocation3 + $0x7] sm:$0x1] %v1668_v42 }
 0x8de   :  { %v794_v43 = vld [vmem:[#allocation3] sm:$0xff] }
 0x8df   :  { %1404 = vmatmul.mubr.f32.vlgmr.msra.gmra.mrb[10].mxu0 %v794_v43 }
 0x9b2   :  { %v865_v45 = vpop.f32.mrb[10].mxu0 }
 0x9b3   :  { %v866_v46 = vadd.f32 %v877_v44, %v865_v45  ;;  %v1405_v47 = vpop.f32.mrb[11].mxu0 }
 0x9b5   :  { %870 = vst.msk [vmem:[%s2000_s3] sm:$0xff] %vm869_vm2, %v866_v46 }

</bundles_post_ra>
